<compile_context>
chip_gen: v7x
topology: tpu7x:2x2x1
jax: 0.10.0
libtpu: 0.0.40
codegen_flags: <defaults>
</compile_context>

<pallas_src>
import jax
import jax.numpy as jnp
from jax import lax
from jax.experimental import pallas as pl
from jax.experimental.pallas import tpu as pltpu

N_NODES = 64
IN_FEATURES = 16
OUT_FEATURES = 32
N_EDGES = 128  # maps exactly onto the 128-lane vreg width


def _fused_kernel(x_ref, w_ref, a_ref, edge_ref, h_ref, ew_ref):
    # x_ref:    (N, F_in)   f32
    # w_ref:    (F_in, F_out) f32
    # a_ref:    (F_out, 1)  f32
    # edge_ref: (2, E)      int32, row 0 = src, row 1 = dst
    # h_ref:    (N, F_out)  f32 output
    # ew_ref:   (1, E)      f32 output (lane-dense, unmasked store)

    # ---- h = inputs @ weight (MXU, f32 accumulation) -----------------------
    h = jnp.dot(x_ref[...], w_ref[...], preferred_element_type=jnp.float32)
    h_ref[...] = h

    n = h.shape[0]
    e = edge_ref.shape[1]

    # ---- signed incidence matrix: inc[v, e] = [v==src[e]] - [v==dst[e]] ----
    src = edge_ref[0:1, :]                                   # (1, E)
    dst = edge_ref[1:2, :]                                   # (1, E)
    node_ids = lax.broadcasted_iota(jnp.int32, (n, e), 0)    # (N, E)
    inc = ((node_ids == src).astype(jnp.float32)
           - (node_ids == dst).astype(jnp.float32))          # (N, E)

    # ---- gather + subtract in one matmul: diffT[f, e] = h[src[e],f]-h[dst[e],f]
    diff_t = lax.dot_general(
        h, inc, (((0,), (0,)), ((), ())),
        preferred_element_type=jnp.float32)                  # (F_out, E)
    abs_diff = jnp.abs(diff_t)                               # (F_out, E)

    # ---- ew = relu(a^T @ |diffT|) -> (1, E) --------------------------------
    ew = lax.dot_general(
        a_ref[...], abs_diff, (((0,), (0,)), ((), ())),
        preferred_element_type=jnp.float32)                  # (1, E)
    ew_ref[...] = jnp.maximum(ew, 0.0)


def sparse_graph_learn_forward(inputs, edge, weight, a):
    """Fused Pallas forward of SparseGraphLearn.

    inputs: (N, in_features) f32
    edge:   (2, E) int32
    weight: (in_features, out_features) f32
    a:      (out_features, 1) f32
    Returns (h, edge_weight): h (N, out_features) f32, edge_weight (E,) f32.
    """
    n, f_in = inputs.shape
    f_out = weight.shape[1]
    e = edge.shape[1]

    edge_i32 = edge.astype(jnp.int32)

    h, ew = pl.pallas_call(
        _fused_kernel,
        out_shape=(jax.ShapeDtypeStruct((n, f_out), jnp.float32),
                   jax.ShapeDtypeStruct((1, e), jnp.float32)),
        grid=(1,),
        in_specs=[pl.BlockSpec((n, f_in), lambda i: (0, 0)),     # inputs
                  pl.BlockSpec((f_in, f_out), lambda i: (0, 0)),  # weight
                  pl.BlockSpec((f_out, 1), lambda i: (0, 0)),     # a
                  pl.BlockSpec((2, e), lambda i: (0, 0))],        # edge (2,E)
        out_specs=(pl.BlockSpec((n, f_out), lambda i: (0, 0)),
                   pl.BlockSpec((1, e), lambda i: (0, 0))),
        compiler_params=pltpu.CompilerParams(
            dimension_semantics=("arbitrary",)),
    )(inputs, weight, a, edge_i32)

    edge_weight = jnp.squeeze(ew, axis=0)  # matches torch.squeeze -> (E,)
    return h, edge_weight


def _xavier_uniform(key, shape):
    # torch.nn.init.xavier_uniform_ bound for a 2D tensor.
    bound = (6.0 / (shape[0] + shape[1])) ** 0.5
    return jax.random.uniform(key, shape, jnp.float32, -bound, bound)


if __name__ == "__main__":
    key = jax.random.PRNGKey(0)
    k_x, k_e, k_w, k_a = jax.random.split(key, 4)

    inputs = jax.random.normal(k_x, (N_NODES, IN_FEATURES), dtype=jnp.float32)
    edge = jax.random.randint(k_e, (2, N_EDGES), 0, N_NODES, dtype=jnp.int32)

    # Deterministic parameter init matching __init__ shapes.
    weight = _xavier_uniform(k_w, (IN_FEATURES, OUT_FEATURES))
    a = _xavier_uniform(k_a, (OUT_FEATURES, 1))
    # bias is declared by the PyTorch module but never used in forward();
    # kept here for parity — do NOT add it to h.
    bias = jnp.zeros((OUT_FEATURES,), jnp.float32)

    fwd = jax.jit(sparse_graph_learn_forward)
    h, ew = fwd(inputs, edge, weight, a)
    jax.block_until_ready((h, ew))

    # Pure-JAX reference check.
    h_ref = inputs @ weight
    d_ref = jnp.abs(h_ref[edge[0]] - h_ref[edge[1]])
    ew_ref = jnp.maximum(jnp.squeeze(d_ref @ a, axis=1), 0.0)

    assert h.shape == (N_NODES, OUT_FEATURES)
    assert ew.shape == (N_EDGES,)
    assert jnp.allclose(h, h_ref, atol=1e-5, rtol=1e-5)
    assert jnp.allclose(ew, ew_ref, atol=1e-5, rtol=1e-5)

    print("KERNEL_OK")
</pallas_src>

<mosaic_0001>
module attributes {stable_mosaic.version = 11 : i64} {
  func.func @_fused_kernel(%arg0: i32, %arg1: memref<64x16xf32, #tpu.memory_space<vmem>>, %arg2: memref<16x32xf32, #tpu.memory_space<vmem>>, %arg3: memref<32x1xf32, #tpu.memory_space<vmem>>, %arg4: memref<2x128xi32, #tpu.memory_space<vmem>>, %arg5: memref<64x32xf32, #tpu.memory_space<vmem>>, %arg6: memref<1x128xf32, #tpu.memory_space<vmem>>) attributes {dimension_semantics = [#tpu.dimension_semantics<arbitrary>], iteration_bounds = array<i64: 1>, scalar_prefetch = 0 : i64, scratch_operands = 0 : i64, tpu.core_type = #tpu.core_type<tc>, window_params = [{pipeline_mode = #tpu.pipeline_mode<synchronous>, transform_indices = @transform_0, window_bounds = array<i64: 64, 16>}, {pipeline_mode = #tpu.pipeline_mode<synchronous>, transform_indices = @transform_1, window_bounds = array<i64: 16, 32>}, {pipeline_mode = #tpu.pipeline_mode<synchronous>, transform_indices = @transform_2, window_bounds = array<i64: 32, 1>}, {pipeline_mode = #tpu.pipeline_mode<synchronous>, transform_indices = @transform_3, window_bounds = array<i64: 2, 128>}, {pipeline_mode = #tpu.pipeline_mode<synchronous>, transform_indices = @transform_4, window_bounds = array<i64: 64, 32>}, {pipeline_mode = #tpu.pipeline_mode<synchronous>, transform_indices = @transform_5, window_bounds = array<i64: 1, 128>}]} {
    %c0 = arith.constant 0 : index
    %c0_0 = arith.constant 0 : index
    %0 = vector.load %arg1[%c0, %c0_0] : memref<64x16xf32, #tpu.memory_space<vmem>>, vector<64x16xf32>
    %c0_1 = arith.constant 0 : index
    %c0_2 = arith.constant 0 : index
    %1 = vector.load %arg2[%c0_1, %c0_2] : memref<16x32xf32, #tpu.memory_space<vmem>>, vector<16x32xf32>
    %cst = arith.constant dense<0.000000e+00> : vector<64x32xf32>
    %2 = tpu.matmul %0, %1, %cst {dimension_numbers = #tpu.dot_dimension_numbers<[1], [0], [0], [1], [0, 0, 1, 1], [], []>} : vector<64x16xf32>, vector<16x32xf32>, vector<64x32xf32> -> vector<64x32xf32>
    %c0_3 = arith.constant 0 : index
    %c0_4 = arith.constant 0 : index
    %3 = vector.load %arg5[%c0_3, %c0_4] : memref<64x32xf32, #tpu.memory_space<vmem>>, vector<64x32xf32>
    tpu.vector_store %arg5[%c0_3, %c0_4], %2 {strides = array<i32>} : memref<64x32xf32, #tpu.memory_space<vmem>>, vector<64x32xf32>,
    %c0_5 = arith.constant 0 : index
    %c0_6 = arith.constant 0 : index
    %4 = vector.load %arg4[%c0_5, %c0_6] : memref<2x128xi32, #tpu.memory_space<vmem>>, vector<1x128xi32>
    %c1 = arith.constant 1 : index
    %c0_7 = arith.constant 0 : index
    %5 = vector.load %arg4[%c1, %c0_7] : memref<2x128xi32, #tpu.memory_space<vmem>>, vector<1x128xi32>
    %6 = tpu.iota {dimensions = array<i32: 0>} : vector<64x128xi32>
    %7 = vector.broadcast %4 : vector<1x128xi32> to vector<64x128xi32>
    %8 = arith.cmpi eq, %6, %7 : vector<64x128xi32>
    %9 = arith.extui %8 : vector<64x128xi1> to vector<64x128xi32>
    %10 = arith.sitofp %9 : vector<64x128xi32> to vector<64x128xf32>
    %11 = vector.broadcast %5 : vector<1x128xi32> to vector<64x128xi32>
    %12 = arith.cmpi eq, %6, %11 : vector<64x128xi32>
    %13 = arith.extui %12 : vector<64x128xi1> to vector<64x128xi32>
    %14 = arith.sitofp %13 : vector<64x128xi32> to vector<64x128xf32>
    %15 = arith.subf %10, %14 : vector<64x128xf32>
    %cst_8 = arith.constant dense<0.000000e+00> : vector<32x128xf32>
    %16 = tpu.matmul %2, %15, %cst_8 {dimension_numbers = #tpu.dot_dimension_numbers<[0], [0], [1], [1], [0, 1, 1, 1], [], []>} : vector<64x32xf32>, vector<64x128xf32>, vector<32x128xf32> -> vector<32x128xf32>
    %17 = math.absf %16 : vector<32x128xf32>
    %c0_9 = arith.constant 0 : index
    %c0_10 = arith.constant 0 : index
    %18 = vector.load %arg3[%c0_9, %c0_10] : memref<32x1xf32, #tpu.memory_space<vmem>>, vector<32x1xf32>
    %cst_11 = arith.constant dense<0.000000e+00> : vector<1x128xf32>
    %19 = tpu.matmul %18, %17, %cst_11 {dimension_numbers = #tpu.dot_dimension_numbers<[0], [0], [1], [1], [0, 1, 1, 1], [], []>} : vector<32x1xf32>, vector<32x128xf32>, vector<1x128xf32> -> vector<1x128xf32>
    %cst_12 = arith.constant 0.000000e+00 : f32
    %20 = vector.broadcast %cst_12 : f32 to vector<1x128xf32>
    %21 = arith.maximumf %19, %20 : vector<1x128xf32>
    %c0_13 = arith.constant 0 : index
    %c0_14 = arith.constant 0 : index
    %22 = vector.load %arg6[%c0_13, %c0_14] : memref<1x128xf32, #tpu.memory_space<vmem>>, vector<1x128xf32>
    tpu.vector_store %arg6[%c0_13, %c0_14], %21 {strides = array<i32>} : memref<1x128xf32, #tpu.memory_space<vmem>>, vector<1x128xf32>,
    return
  }
  func.func @transform_0(%arg0: i32) -> (i32, i32) {
    %c0_i32 = arith.constant 0 : i32
    %c0_i32_0 = arith.constant 0 : i32
    %c0_i32_1 = arith.constant 0 : i32
    return %c0_i32, %c0_i32_0 : i32, i32
  }
  func.func @transform_1(%arg0: i32) -> (i32, i32) {
    %c0_i32 = arith.constant 0 : i32
    %c0_i32_0 = arith.constant 0 : i32
    %c0_i32_1 = arith.constant 0 : i32
    return %c0_i32, %c0_i32_0 : i32, i32
  }
  func.func @transform_2(%arg0: i32) -> (i32, i32) {
    %c0_i32 = arith.constant 0 : i32
    %c0_i32_0 = arith.constant 0 : i32
    %c0_i32_1 = arith.constant 0 : i32
    return %c0_i32, %c0_i32_0 : i32, i32
  }
  func.func @transform_3(%arg0: i32) -> (i32, i32) {
    %c0_i32 = arith.constant 0 : i32
    %c0_i32_0 = arith.constant 0 : i32
    %c0_i32_1 = arith.constant 0 : i32
    return %c0_i32, %c0_i32_0 : i32, i32
  }
  func.func @transform_4(%arg0: i32) -> (i32, i32) {
    %c0_i32 = arith.constant 0 : i32
    %c0_i32_0 = arith.constant 0 : i32
    %c0_i32_1 = arith.constant 0 : i32
    return %c0_i32, %c0_i32_0 : i32, i32
  }
  func.func @transform_5(%arg0: i32) -> (i32, i32) {
    %c0_i32 = arith.constant 0 : i32
    %c0_i32_0 = arith.constant 0 : i32
    %c0_i32_1 = arith.constant 0 : i32
    return %c0_i32, %c0_i32_0 : i32, i32
  }
}

</mosaic_0001>

<bundles_post_ra>
// kernel: sparse_graph_learn_forward.1
= control target key start
LH: loop header
LB: loop body
LE: loop exit
PB: predicated region body
PF: predicated region fallthrough
CT: control target
= control target key end

     0   :  { %vm30_vm0 = vcmask 130048   ;;  %s820_s0 = inlined_call_operand.vmem [shape: f32[64,16], index: 0, kind: input, shape index: {}]   ;;  %s821_s1 = inlined_call_operand.vmem [shape: f32[16,32], index: 1, kind: input, shape index: {}]   ;;  %s822_s2 = inlined_call_operand.vmem [shape: f32[32,1], index: 2, kind: input, shape index: {}]   ;;  %s823_s3 = inlined_call_operand.vmem [shape: s32[2,128], index: 3, kind: input, shape index: {}]   ;;  %s824_s4 = inlined_call_operand.vmem [shape: f32[64,32], index: 4, kind: output, shape index: {0}]   ;;  %s825_s5 = inlined_call_operand.hbm [shape: f32[1,128], index: 5, kind: output, shape index: {1}]  }
   0x1   :  { %v28_v0 = vld [vmem:[%s821_s1] sm:$0xff]  ;;  %v29_v1 = vld [vmem:[%s821_s1 + $0x8] sm:$0xff] }
   0x2   :  { %v20_v2 = vld [vmem:[%s820_s0] sm:$0xff]  ;;  %v614_v3 = vpack.c.bf16 %v29_v1, %v28_v0 }
   0x3   :  { %569 = vmatprep.mubr.msk.f32.mxu0 %vm30_vm0, %v20_v2 }
   0x4   :  { %615 = vmatprep.subr.bf16.mxu0 %v614_v3 }
   0x5   :  { %11 = vsyncpa [#allocation3], 0  ;;  %617 = vmatpush3.bf16.msra.mxu0 %v614_v3  ;;  %v21_v4 = vld [vmem:[%s820_s0 + $0x8] sm:$0xff]  ;;  %v22_v5 = vld [vmem:[%s820_s0 + $0x10] sm:$0xff]  ;;  %v171_v11 = vlaneseq  ;;  %v668_v17 = vmov 0.0   ;;  %vm160_vm13 = vcmask 261120  }
   0x6   :  { %v23_v6 = vld [vmem:[%s820_s0 + $0x18] sm:$0xff]  ;;  %v24_v7 = vld [vmem:[%s820_s0 + $0x20] sm:$0xff]  ;;  %v25_v8 = vld [vmem:[%s820_s0 + $0x28] sm:$0xff]  ;;  %v669_v3 = vmov 0.0|0.0  }
   0x7   :  { %v26_v9 = vld [vmem:[%s820_s0 + $0x30] sm:$0xff]  ;;  %v27_v10 = vld [vmem:[%s820_s0 + $0x38] sm:$0xff]  ;;  %v515_v12 = vld [vmem:[%s823_s3] ss:$0 sm:$0xff]  ;;  %v172_v14 = vshrl.u32 %v171_v11, 7  ;;  %634 = vmatprep.subr.bf16.mxu0 %v669_v3 }
   0x8   :  { %570 = vmatmul.mubr.msk.f32.vlgmr.msra.gmra.mrb[0].mxu0 %vm30_vm0, %v21_v4  ;;  %v524_v13 = vld [vmem:[%s823_s3 + $0x1] ss:$0 sm:$0xff]  ;;  %v379_v60 = vld [vmem:[%s822_s2 + $0x8] sm:$0xff]  ;;  %v380_v61 = vld [vmem:[%s822_s2 + $0x10] sm:$0xff] }
   0x9   :  { %572 = vmatprep.mubr.msk.f32.mxu0 %vm30_vm0, %v22_v5  ;;  %v173_v15 = vadd.s32 8, %v172_v14  ;;  %vm184_vm1 = vcmp.eq.s32.totalorder %v172_v14, %v515_v12  ;;  %vm212_vm2 = vcmp.eq.s32.totalorder %v172_v14, %v524_v13  ;;  %v174_v16 = vadd.s32 16, %v172_v14  ;;  %v378_v59 = vld [vmem:[%s822_s2] sm:$0xff]  ;;  %v381_v62 = vld [vmem:[%s822_s2 + $0x18] sm:$0xff]  ;;  %s671_s2 = smov [#allocation2]  }
   0xa   :  { %v516_v18 = vsel %vm184_vm1, 1.0, %v668_v17  ;;  %v525_v19 = vsel %vm212_vm2, 1.0, %v668_v17  ;;  %v175_v20 = vadd.s32 24, %v172_v14  ;;  %v176_v21 = vadd.s32 32, %v172_v14  ;;  %382 = vxpose.xlu1.b32.start [1/4] (short) (narrow) %v378_v59, 8 }
   0xb   :  { %vm185_vm3 = vcmp.eq.s32.totalorder %v173_v15, %v515_v12  ;;  %vm213_vm4 = vcmp.eq.s32.totalorder %v173_v15, %v524_v13  ;;  %v236_v22 = vsub.f32 %v516_v18, %v525_v19  ;;  %vm186_vm5 = vcmp.eq.s32.totalorder %v174_v16, %v515_v12 }
   0xc   :  { %573 = vmatmul.mubr.msk.f32.gmra.mrb[2].mxu0 %vm30_vm0, %v23_v6  ;;  %v517_v23 = vsel %vm185_vm3, 1.0, %v668_v17  ;;  %v526_v24 = vsel %vm213_vm4, 1.0, %v668_v17  ;;  %vm187_vm6 = vcmp.eq.s32.totalorder %v175_v20, %v515_v12  ;;  %v518_v25 = vsel %vm186_vm5, 1.0, %v668_v17 }
   0xd   :  { %575 = vmatprep.mubr.msk.f32.mxu0 %vm30_vm0, %v24_v7  ;;  %v237_v26 = vsub.f32 %v517_v23, %v526_v24  ;;  %v519_v27 = vsel %vm187_vm6, 1.0, %v668_v17  ;;  %vm214_vm7 = vcmp.eq.s32.totalorder %v174_v16, %v524_v13  ;;  %vm215_vm8 = vcmp.eq.s32.totalorder %v175_v20, %v524_v13 }
   0xe   :  { %v527_v28 = vsel %vm214_vm7, 1.0, %v668_v17  ;;  %v528_v29 = vsel %vm215_vm8, 1.0, %v668_v17  ;;  %v177_v30 = vadd.s32 40, %v172_v14  ;;  %vm188_vm9 = vcmp.eq.s32.totalorder %v176_v21, %v515_v12  ;;  %383 = vxpose.xlu1.b32.cont [2/4] (short) (narrow) %v379_v60, 8 }
   0xf   :  { %v618_v31 = vpack.c.bf16 %v237_v26, %v236_v22  ;;  %v238_v32 = vsub.f32 %v518_v25, %v527_v28  ;;  %v239_v33 = vsub.f32 %v519_v27, %v528_v29  ;;  %v520_v34 = vsel %vm188_vm9, 1.0, %v668_v17 }
  0x10   :  { %576 = vmatmul.mubr.msk.f32.gmra.mrb[4].mxu0 %vm30_vm0, %v25_v8  ;;  %vm189_vm10 = vcmp.eq.s32.totalorder %v177_v30, %v515_v12  ;;  %vm216_vm11 = vcmp.eq.s32.totalorder %v176_v21, %v524_v13  ;;  %vm217_vm12 = vcmp.eq.s32.totalorder %v177_v30, %v524_v13  ;;  %v178_v42 = vadd.s32 48, %v172_v14 }
  0x11   :  { %578 = vmatprep.mubr.msk.f32.mxu0 %vm30_vm0, %v26_v9  ;;  %619 = vmatprep.subr.bf16.mxu1 %v618_v31  ;;  %v622_v35 = vpack.c.bf16 %v239_v33, %v238_v32  ;;  %v521_v36 = vsel %vm189_vm10, 1.0, %v668_v17  ;;  %v529_v37 = vsel %vm216_vm11, 1.0, %v668_v17  ;;  %v530_v38 = vsel %vm217_vm12, 1.0, %v668_v17 }
  0x12   :  { %621 = vmatpush3.bf16.msra.mxu1 %v618_v31  ;;  %v240_v39 = vsub.f32 %v520_v34, %v529_v37  ;;  %v241_v40 = vsub.f32 %v521_v36, %v530_v38  ;;  %v179_v43 = vadd.s32 56, %v172_v14  ;;  %vm190_vm14 = vcmp.eq.s32.totalorder %v178_v42, %v515_v12  ;;  %384 = vxpose.xlu1.b32.cont [3/4] (short) (narrow) %v380_v61, 8 }
  0x13   :  { %623 = vmatprep.subr.bf16.mxu1 %v622_v35  ;;  %v522_v44 = vsel %vm190_vm14, 1.0, %v668_v17  ;;  %vm276_vm2 = vcmask 523264   ;;  %vm670_vm3 = vmmov 0  }
  0x14   :  { %579 = vmatmul.mubr.msk.f32.gmra.mrb[6].mxu0 %vm30_vm0, %v27_v10  ;;  %v626_v41 = vpack.c.bf16 %v241_v40, %v240_v39  ;;  %vm191_vm15 = vcmp.eq.s32.totalorder %v179_v43, %v515_v12  ;;  %vm218_vm0 = vcmp.eq.s32.totalorder %v178_v42, %v524_v13  ;;  %vm219_vm1 = vcmp.eq.s32.totalorder %v179_v43, %v524_v13 }
  0x15   :  { %v523_v45 = vsel %vm191_vm15, 1.0, %v668_v17  ;;  %v531_v46 = vsel %vm218_vm0, 1.0, %v668_v17  ;;  %v532_v47 = vsel %vm219_vm1, 1.0, %v668_v17  ;;  %611 = vmatprep.mubr.msk.f32.mxu0 %vm670_vm3, %v668_v17 }
  0x16   :  { %625 = vmatpush3.bf16.msra.mxu1 %v622_v35  ;;  %v242_v48 = vsub.f32 %v522_v44, %v531_v46  ;;  %v243_v49 = vsub.f32 %v523_v45, %v532_v47  ;;  %385 = vxpose.xlu1.b32.end [4/4] (short) (narrow) %v381_v62, 8 }
  0x17   :  { %627 = vmatprep.subr.bf16.mxu1 %v626_v41 }
  0x18   :  { %v630_v52 = vpack.c.bf16 %v243_v49, %v242_v48 }
  0x1a   :  { %629 = vmatpush3.bf16.msra.mxu1 %v626_v41 }
  0x1b   :  { %631 = vmatprep.subr.bf16.mxu1 %v630_v52 }
  0x1e   :  { %633 = vmatpush3.bf16.msra.mxu1 %v630_v52 }
  0x8a   :  { %v398_v14 = vpop.trf.xlu1 }
  0xdb   :  { %v571_v50 = vpop.f32.mrb[0].mxu0 }
  0xdc   :  { %162 = vst.msk [vmem:[%s824_s4 + $0x8] sm:$0xff] %vm160_vm13, %v571_v50  ;;  %v121_v51 = vpop.f32.mrb[1].mxu0 }
  0xdd   :  { %161 = vst.msk [vmem:[%s824_s4] sm:$0xff] %vm160_vm13, %v121_v51  ;;  %244 = vxpose.xlu0.b32.start [1/8] (short) (narrow) %v121_v51, 32 }
  0xdf   :  { %v574_v53 = vpop.f32.mrb[2].mxu0 }
  0xe0   :  { %164 = vst.msk [vmem:[%s824_s4 + $0x18] sm:$0xff] %vm160_vm13, %v574_v53  ;;  %v131_v54 = vpop.f32.mrb[3].mxu0 }
  0xe1   :  { %245 = vxpose.xlu0.b32.cont [2/8] (short) (narrow) %v571_v50, 32  ;;  %163 = vst.msk [vmem:[%s824_s4 + $0x10] sm:$0xff] %vm160_vm13, %v131_v54 }
  0xe3   :  { %v577_v55 = vpop.f32.mrb[4].mxu0 }
  0xe4   :  { %166 = vst.msk [vmem:[%s824_s4 + $0x28] sm:$0xff] %vm160_vm13, %v577_v55  ;;  %v141_v56 = vpop.f32.mrb[5].mxu0 }
  0xe5   :  { %246 = vxpose.xlu0.b32.cont [3/8] (short) (narrow) %v131_v54, 32  ;;  %165 = vst.msk [vmem:[%s824_s4 + $0x20] sm:$0xff] %vm160_vm13, %v141_v56 }
  0xe7   :  { %v580_v57 = vpop.f32.mrb[6].mxu0 }
  0xe8   :  { %168 = vst.msk [vmem:[%s824_s4 + $0x38] sm:$0xff] %vm160_vm13, %v580_v57  ;;  %v151_v58 = vpop.f32.mrb[7].mxu0 }
  0xe9   :  { %247 = vxpose.xlu0.b32.cont [4/8] (short) (narrow) %v574_v53, 32  ;;  %167 = vst.msk [vmem:[%s824_s4 + $0x30] sm:$0xff] %vm160_vm13, %v151_v58  ;;  %s497_s4 = sshll.u32 %s671_s2, 4  ;;  %s498_s4 = int_to_ptr.vmem [resolvable:$true] %s497_s4 }
  0xea   :  { %s644_s12 = scalar_lea.vmem %s498_s4, 16  ;;  %s648_s13 = scalar_lea.vmem %s498_s4, 32 }
  0xeb   :  { %p645_p0 = scmp.ne.s32.totalorder %s498_s4, %s644_s12  ;;  %p649_p1 = scmp.lt.s32.totalorder %s498_s4, %s498_s4 }
  0xec   :  { %p650_p2 = scmp.lt.s32.totalorder %s648_s13, %s644_s12 }
  0xed   :  { %248 = vxpose.xlu0.b32.cont [5/8] (short) (narrow) %v141_v56, 32 }
  0xee   :  { %p651_p3 = por %p650_p2, %p649_p1 }
  0xf0   :  { %p652_p4 = pnand %p651_p3, %p645_p0 }
  0xf1   :  { %249 = vxpose.xlu0.b32.cont [6/8] (short) (narrow) %v577_v55, 32 }
  0xf5   :  { %250 = vxpose.xlu0.b32.cont [7/8] (short) (narrow) %v151_v58, 32 }
  0xf9   :  { %251 = vxpose.xlu0.b32.end [8/8] (short) (narrow) %v580_v57, 32 }
 0x15d   :  { %v260_v63 = vpop.trf.xlu0 }
 0x15e   :  { %597 = vmatprep.mubr.msk.f32.mxu1 %vm276_vm2, %v260_v63 }
 0x161   :  { %v261_v0 = vpop.trf.xlu0 }
 0x162   :  { %598 = vmatmul.mubr.msk.f32.vlgmr.msra.gmra.mrb[0].mxu1 %vm276_vm2, %v261_v0 }
 0x165   :  { %v262_v1 = vpop.trf.xlu0 }
 0x166   :  { %600 = vmatprep.mubr.msk.f32.mxu1 %vm276_vm2, %v262_v1 }
 0x169   :  { %v263_v2 = vpop.trf.xlu0 }
 0x16a   :  { %601 = vmatmul.mubr.msk.f32.gmra.mrb[2].mxu1 %vm276_vm2, %v263_v2 }
 0x235   :  { %v599_v4 = vpop.f32.mrb[0].mxu1 }
 0x236   :  { %v375_v5 = vand.u32 2147483647, %v599_v4  ;;  %v355_v6 = vpop.f32.mrb[1].mxu1 }
 0x237   :  { %v374_v7 = vand.u32 2147483647, %v355_v6 }
 0x239   :  { %v635_v8 = vpack.c.bf16 %v375_v5, %v374_v7 }
 0x23b   :  { %636 = vmatpush3.bf16.msra.mxu0 %v635_v8 }
 0x23c   :  { %637 = vmatprep.subr.bf16.mxu0 %v669_v3 }
 0x23d   :  { %v602_v9 = vpop.f32.mrb[2].mxu1 }
 0x23e   :  { %v377_v10 = vand.u32 2147483647, %v602_v9  ;;  %v365_v11 = vpop.f32.mrb[3].mxu1 }
 0x23f   :  { %v376_v12 = vand.u32 2147483647, %v365_v11 }
 0x241   :  { %v638_v13 = vpack.c.bf16 %v377_v10, %v376_v12 }
 0x243   :  { %639 = vmatpush3.bf16.msra.mxu0 %v638_v13 }
 0x246   :  { %612 = vmatmul.mubr.msk.f32.vlgmr.msra.gmra.mrb[8].mxu0 %vm160_vm13, %v398_v14 }
 0x319   :  { %v483_v15 = vpop.f32.mrb[8].mxu0 }
 0x31a   :  { %v487_v16 = vmax.f32 %v483_v15, 0.0  ;;  %v613_v17 = vpop.f32.mrb[9].mxu0 }
 0x31c   :  { %488 = vst [vmem:[#allocation2] sm:$0x1] %v487_v16 }
 0x31d   :  { %655 = shalt.err (!%p652_p4)
}
 0x31e   :  { %s656_s0 = scalar_lea.hbm %s825_s5, 16 }
 0x31f   :  { %p657_p5 = scmp.ne.s32.totalorder %s825_s5, %s656_s0  ;;  %p660_p6 = scmp.lt.u32.totalorder %s656_s0, %s825_s5 }
 0x321   :  { %p662_p7 = pnand %p660_p6, %p657_p5 }
 0x323   :  { %665 = shalt.err (!%p662_p7)
}
 0x324   :  { %500 = dma.vmem_to_hbm [thread:$0]  %s498_s4, 16, %s825_s5, [#allocation3]  }
 0x325   :  { %666 = dma.done.wait [#allocation3], 16  }
 0x326   :  { %667 = vsyncadd [#allocation3], 4294967280 }
 0x327   :  { %506 = vsyncpa [#allocation3], 1 }

</bundles_post_ra>
